<compile_context>
chip_gen: v7x
topology: tpu7x:2x2x1
jax: 0.10.0
libtpu: 0.0.40
codegen_flags: <defaults>
</compile_context>

<pallas_src>
import jax
import jax.numpy as jnp
from jax import lax
from jax.experimental import pallas as pl
from jax.experimental.pallas import tpu as pltpu


# --------------------------------------------------------------------------- #
# Hardware-aware configuration
# --------------------------------------------------------------------------- #
def _tpu_generation() -> int:
    """Best-effort TPU generation detection (defaults to v6e behavior)."""
    try:
        kind = jax.devices()[0].device_kind.lower()
    except Exception:
        return 6
    for g in (7, 6, 5):
        if f"v{g}" in kind:
            return g
    return 6


def _vmem_limit_bytes(gen: int) -> int:
    # v7x: 64 MiB physical per TC -> leave headroom for compiler scratch.
    # v5e/v6e: 128 MiB physical -> raise the scoped limit above the default.
    return (52 if gen >= 7 else 96) * 1024 * 1024


def _pick_block_b(batch: int, seq: int, hidden: int, *, gen: int,
                  vmem_limit: int) -> int:
    """Pick a batch block size that divides `batch`, fits the VMEM budget,
    targets enough matmul rows to amortize per-step overhead, and (on v7x
    only) keeps >= 2 grid steps so both TensorCores get work."""
    num_tc = 2 if gen >= 7 else 1
    target_rows = 256 if gen >= 7 else 512

    def vmem_bytes(bt: int) -> int:
        rows = bt * seq
        x_blk = rows * hidden * 2            # bf16 x block
        out_blk = rows * hidden * 4          # f32 output block
        w_res = hidden * hidden * 2 + hidden * 4
        # live intermediates: proj (f32 + bf16), scores/e/p (f32), p (bf16)
        inter = rows * hidden * 6 + bt * seq * seq * (4 * 3 + 2)
        return 2 * (x_blk + out_blk) + w_res + inter  # 2x pipeline buffers

    divisors = [d for d in range(1, batch + 1) if batch % d == 0]
    fitting = [d for d in divisors if vmem_bytes(d) <= 0.6 * vmem_limit] or [1]
    if num_tc > 1:
        multi = [d for d in fitting if batch // d >= num_tc]
        if multi:
            fitting = multi
    meets = [d for d in fitting if d * seq >= target_rows]
    return min(meets) if meets else max(fitting)


# --------------------------------------------------------------------------- #
# Kernel
# --------------------------------------------------------------------------- #
def slot_attention_kernel(x_ref, w_ref, b_ref, o_ref):
    # x_ref: (Bt, S, H) bf16   w_ref: (H, H) bf16   b_ref: (1, H) f32
    # o_ref: (Bt, S, H) f32
    bt, s, h = x_ref.shape

    xb = x_ref[...]                           # bf16 MXU operand (cast in wrapper)
    wb = w_ref[...]                           # bf16
    bias = b_ref[...]                         # f32 (1, H)

    # ---- projection: Linear(x) = x @ W^T + b, folded over Bt*S rows --------
    x2d = xb.reshape(bt * s, h)               # collapse leading dims
    proj = lax.dot_general(                   # contract last dims: no transpose
        x2d, wb,
        dimension_numbers=(((1,), (1,)), ((), ())),
        preferred_element_type=jnp.float32)   # (Bt*S, H) f32 accumulate
    proj = (proj + bias).reshape(bt, s, h)    # f32

    # ---- scores: proj @ x^T over the hidden dim (batched, no transpose) ----
    # TODO(synk): for production seq_len, tile over key blocks with an online
    # (flash-style) softmax so the (S, S) block fits v7x's 64 MiB VMEM.
    scores = lax.dot_general(
        proj.astype(jnp.bfloat16), xb,
        dimension_numbers=(((2,), (2,)), ((0,), (0,))),
        preferred_element_type=jnp.float32)   # (Bt, S, S) f32

    # ---- softmax over the last axis, strictly in f32 (VPU + EUP) -----------
    scores = scores - jnp.max(scores, axis=-1, keepdims=True)
    e = jnp.exp(scores)
    p = e / jnp.sum(e, axis=-1, keepdims=True)   # exact divide: torch.softmax parity

    # ---- output: softmax(scores) @ x ----------------------------------------
    out = lax.dot_general(
        p.astype(jnp.bfloat16), xb,
        dimension_numbers=(((2,), (1,)), ((0,), (0,))),
        preferred_element_type=jnp.float32)   # (Bt, S, H)
    o_ref[...] = out.astype(o_ref.dtype)


# --------------------------------------------------------------------------- #
# Wrapper
# --------------------------------------------------------------------------- #
def slot_attention(x, w, b, *, block_b=None):
    """x: (B, S, H) f32, w: (H, H) [nn.Linear weight], b: (H,) -> (B, S, H) f32."""
    B, S, H = x.shape
    gen = _tpu_generation()
    vmem_limit = _vmem_limit_bytes(gen)
    bt = block_b if block_b is not None else _pick_block_b(
        B, S, H, gen=gen, vmem_limit=vmem_limit)
    assert B % bt == 0, "block_b must divide the batch size"
    grid = (B // bt,)

    # Cast once in the wrapper; the kernel only consumes bf16 MXU operands.
    x_bf = x.astype(jnp.bfloat16)
    w_bf = w.astype(jnp.bfloat16)
    b2d = b.reshape(1, H).astype(jnp.float32)

    def run(use_buffered: bool):
        resident = (dict(pipeline_mode=pl.Buffered(1))
                    if (use_buffered and hasattr(pl, "Buffered")) else {})
        out = pl.pallas_call(
            slot_attention_kernel,
            out_shape=jax.ShapeDtypeStruct((B, S, H), x.dtype),
            grid_spec=pltpu.PrefetchScalarGridSpec(
                num_scalar_prefetch=0,
                grid=grid,
                in_specs=[
                    pl.BlockSpec((bt, S, H), lambda i: (i, 0, 0)),       # x block
                    pl.BlockSpec((H, H), lambda i: (0, 0), **resident),  # weight
                    pl.BlockSpec((1, H), lambda i: (0, 0), **resident),  # bias
                ],
                out_specs=pl.BlockSpec((bt, S, H), lambda i: (i, 0, 0)),
            ),
            compiler_params=pltpu.CompilerParams(
                dimension_semantics=("parallel",),
                vmem_limit_bytes=vmem_limit,
            ),
        )(x_bf, w_bf, b2d)
        return jax.block_until_ready(out)

    try:
        return run(True)
    except Exception:
        # Fallback for builds that reject single-buffered resident BlockSpecs.
        return run(False)


# --------------------------------------------------------------------------- #
# References
# --------------------------------------------------------------------------- #
def slot_attention_ref(x, w, b):
    # Pure f32 reference mirroring the PyTorch forward exactly.
    proj = jnp.einsum("bsh,oh->bso", x, w) + b
    scores = jnp.einsum("bso,bto->bst", proj, x)
    p = jax.nn.softmax(scores, axis=2)
    return jnp.einsum("bst,bth->bsh", p, x)


def slot_attention_ref_mixed(x, w, b):
    # Same math with the kernel's precision strategy (bf16 MXU operands,
    # f32 accumulation, f32 softmax) for a tight-tolerance comparison.
    xb = x.astype(jnp.bfloat16)
    wb = w.astype(jnp.bfloat16)
    proj = jnp.einsum("bsh,oh->bso", xb, wb,
                      preferred_element_type=jnp.float32) + b
    scores = jnp.einsum("bso,bto->bst", proj.astype(jnp.bfloat16), xb,
                        preferred_element_type=jnp.float32)
    p = jax.nn.softmax(scores, axis=2)
    return jnp.einsum("bst,bth->bsh", p.astype(jnp.bfloat16), xb,
                      preferred_element_type=jnp.float32)


if __name__ == "__main__":
    B, S, H = 2, 8, 32  # batch, seq_len, hidden (n_features = H)

    key = jax.random.PRNGKey(0)
    kx, kw, kb = jax.random.split(key, 3)
    x = jax.random.normal(kx, (B, S, H), dtype=jnp.float32)
    # Deterministic synthetic parameters (nn.Linear-style uniform init).
    bound = 1.0 / (H ** 0.5)
    w = jax.random.uniform(kw, (H, H), minval=-bound, maxval=bound,
                           dtype=jnp.float32)
    b = jax.random.uniform(kb, (H,), minval=-bound, maxval=bound,
                           dtype=jnp.float32)

    out = jax.block_until_ready(slot_attention(x, w, b))
    assert out.shape == (B, S, H)
    assert out.dtype == x.dtype

    # Check against a reference using the same bf16/f32 mix. Tolerance allows
    # for a couple of 1-ulp bf16 rounding flips at the cast boundaries.
    ref_mixed = slot_attention_ref_mixed(x, w, b)
    err_mixed = float(jnp.max(jnp.abs(out - ref_mixed)))
    assert err_mixed < 2e-2, \
        f"max abs err vs precision-matched reference: {err_mixed}"

    # Loose sanity check against the pure-f32 reference (bf16 matmul error).
    ref_f32 = slot_attention_ref(x, w, b)
    err_f32 = float(jnp.max(jnp.abs(out - ref_f32)))
    assert err_f32 < 1e-1, f"max abs err vs f32 reference: {err_f32}"

    print("KERNEL_OK")
</pallas_src>

<mosaic_0001>
module attributes {stable_mosaic.version = 11 : i64} {
  func.func @slot_attention_kernel(%arg0: i32, %arg1: memref<2x8x32xbf16, #tpu.memory_space<vmem>>, %arg2: memref<32x32xbf16, #tpu.memory_space<vmem>>, %arg3: memref<1x32xf32, #tpu.memory_space<vmem>>, %arg4: memref<2x8x32xf32, #tpu.memory_space<vmem>>) attributes {dimension_semantics = [#tpu.dimension_semantics<parallel>], iteration_bounds = array<i64: 1>, scalar_prefetch = 0 : i64, scratch_operands = 0 : i64, tpu.core_type = #tpu.core_type<tc>, window_params = [{transform_indices = @transform_0, window_bounds = array<i64: 2, 8, 32>}, {pipeline_mode = #tpu.pipeline_mode<synchronous>, transform_indices = @transform_1, window_bounds = array<i64: 32, 32>}, {pipeline_mode = #tpu.pipeline_mode<synchronous>, transform_indices = @transform_2, window_bounds = array<i64: 1, 32>}, {transform_indices = @transform_3, window_bounds = array<i64: 2, 8, 32>}]} {
    %c0 = arith.constant 0 : index
    %c0_0 = arith.constant 0 : index
    %c0_1 = arith.constant 0 : index
    %0 = vector.load %arg1[%c0, %c0_0, %c0_1] : memref<2x8x32xbf16, #tpu.memory_space<vmem>>, vector<2x8x32xbf16>
    %c0_2 = arith.constant 0 : index
    %c0_3 = arith.constant 0 : index
    %1 = vector.load %arg2[%c0_2, %c0_3] : memref<32x32xbf16, #tpu.memory_space<vmem>>, vector<32x32xbf16>
    %c0_4 = arith.constant 0 : index
    %c0_5 = arith.constant 0 : index
    %2 = vector.load %arg3[%c0_4, %c0_5] : memref<1x32xf32, #tpu.memory_space<vmem>>, vector<1x32xf32>
    %3 = vector.shape_cast %0 : vector<2x8x32xbf16> to vector<16x32xbf16>
    %cst = arith.constant dense<0.000000e+00> : vector<16x32xf32>
    %4 = tpu.matmul %3, %1, %cst {dimension_numbers = #tpu.dot_dimension_numbers<[1], [1], [0], [0], [0, 0, 1, 0], [], []>} : vector<16x32xbf16>, vector<32x32xbf16>, vector<16x32xf32> -> vector<16x32xf32>
    %5 = vector.broadcast %2 : vector<1x32xf32> to vector<16x32xf32>
    %6 = arith.addf %4, %5 : vector<16x32xf32>
    %7 = vector.shape_cast %6 : vector<16x32xf32> to vector<2x8x32xf32>
    %8 = arith.truncf %7 : vector<2x8x32xf32> to vector<2x8x32xbf16>
    %cst_6 = arith.constant dense<0.000000e+00> : vector<2x8x8xf32>
    %9 = tpu.matmul %8, %0, %cst_6 {dimension_numbers = #tpu.dot_dimension_numbers<[2], [2], [1], [1], [0, 0, 0, 1, 1, 1], [0], [0]>} : vector<2x8x32xbf16>, vector<2x8x32xbf16>, vector<2x8x8xf32> -> vector<2x8x8xf32>
    %cst_7 = arith.constant dense<0xFF800000> : vector<2x8xf32>
    %10 = vector.multi_reduction <maximumf>, %9, %cst_7 [2] : vector<2x8x8xf32> to vector<2x8xf32>
    %11 = vector.shape_cast %10 : vector<2x8xf32> to vector<2x8x1xf32>
    %12 = vector.broadcast %11 : vector<2x8x1xf32> to vector<2x8x8xf32>
    %13 = arith.subf %9, %12 : vector<2x8x8xf32>
    %14 = math.exp %13 : vector<2x8x8xf32>
    %cst_8 = arith.constant dense<0.000000e+00> : vector<2x8xf32>
    %15 = vector.multi_reduction <add>, %14, %cst_8 [2] : vector<2x8x8xf32> to vector<2x8xf32>
    %16 = vector.shape_cast %15 : vector<2x8xf32> to vector<2x8x1xf32>
    %17 = vector.broadcast %16 : vector<2x8x1xf32> to vector<2x8x8xf32>
    %18 = arith.divf %14, %17 : vector<2x8x8xf32>
    %19 = arith.truncf %18 : vector<2x8x8xf32> to vector<2x8x8xbf16>
    %cst_9 = arith.constant dense<0.000000e+00> : vector<2x8x32xf32>
    %20 = tpu.matmul %19, %0, %cst_9 {dimension_numbers = #tpu.dot_dimension_numbers<[2], [1], [1], [2], [0, 0, 0, 1, 1, 2], [0], [0]>} : vector<2x8x8xbf16>, vector<2x8x32xbf16>, vector<2x8x32xf32> -> vector<2x8x32xf32>
    %c0_10 = arith.constant 0 : index
    %c0_11 = arith.constant 0 : index
    %c0_12 = arith.constant 0 : index
    %21 = vector.load %arg4[%c0_10, %c0_11, %c0_12] : memref<2x8x32xf32, #tpu.memory_space<vmem>>, vector<2x8x32xf32>
    tpu.vector_store %arg4[%c0_10, %c0_11, %c0_12], %20 {strides = array<i32>} : memref<2x8x32xf32, #tpu.memory_space<vmem>>, vector<2x8x32xf32>,
    return
  }
  func.func @transform_0(%arg0: i32) -> (i32, i32, i32) {
    %c0_i32 = arith.constant 0 : i32
    %c0_i32_0 = arith.constant 0 : i32
    %c0_i32_1 = arith.constant 0 : i32
    return %arg0, %c0_i32, %c0_i32_0 : i32, i32, i32
  }
  func.func @transform_1(%arg0: i32) -> (i32, i32) {
    %c0_i32 = arith.constant 0 : i32
    %c0_i32_0 = arith.constant 0 : i32
    %c0_i32_1 = arith.constant 0 : i32
    return %c0_i32, %c0_i32_0 : i32, i32
  }
  func.func @transform_2(%arg0: i32) -> (i32, i32) {
    %c0_i32 = arith.constant 0 : i32
    %c0_i32_0 = arith.constant 0 : i32
    %c0_i32_1 = arith.constant 0 : i32
    return %c0_i32, %c0_i32_0 : i32, i32
  }
  func.func @transform_3(%arg0: i32) -> (i32, i32, i32) {
    %c0_i32 = arith.constant 0 : i32
    %c0_i32_0 = arith.constant 0 : i32
    %c0_i32_1 = arith.constant 0 : i32
    return %arg0, %c0_i32, %c0_i32_0 : i32, i32, i32
  }
}

module attributes {stable_mosaic.version = 11 : i64} {
  func.func @slot_attention_kernel(%arg0: i32, %arg1: memref<2x8x32xbf16, #tpu.memory_space<vmem>>, %arg2: memref<32x32xbf16, #tpu.memory_space<vmem>>, %arg3: memref<1x32xf32, #tpu.memory_space<vmem>>, %arg4: memref<2x8x32xf32, #tpu.memory_space<vmem>>) attributes {dimension_semantics = [#tpu.dimension_semantics<parallel>], iteration_bounds = array<i64: 1>, scalar_prefetch = 0 : i64, scratch_operands = 0 : i64, tpu.core_type = #tpu.core_type<tc>, window_params = [{transform_indices = @transform_0, window_bounds = array<i64: 2, 8, 32>}, {pipeline_mode = #tpu.pipeline_mode<synchronous>, transform_indices = @transform_1, window_bounds = array<i64: 32, 32>}, {pipeline_mode = #tpu.pipeline_mode<synchronous>, transform_indices = @transform_2, window_bounds = array<i64: 1, 32>}, {transform_indices = @transform_3, window_bounds = array<i64: 2, 8, 32>}]} {
    %c0 = arith.constant 0 : index
    %c0_0 = arith.constant 0 : index
    %c0_1 = arith.constant 0 : index
    %0 = vector.load %arg1[%c0, %c0_0, %c0_1] : memref<2x8x32xbf16, #tpu.memory_space<vmem>>, vector<2x8x32xbf16>
    %c0_2 = arith.constant 0 : index
    %c0_3 = arith.constant 0 : index
    %1 = vector.load %arg2[%c0_2, %c0_3] : memref<32x32xbf16, #tpu.memory_space<vmem>>, vector<32x32xbf16>
    %c0_4 = arith.constant 0 : index
    %c0_5 = arith.constant 0 : index
    %2 = vector.load %arg3[%c0_4, %c0_5] : memref<1x32xf32, #tpu.memory_space<vmem>>, vector<1x32xf32>
    %3 = vector.shape_cast %0 : vector<2x8x32xbf16> to vector<16x32xbf16>
    %cst = arith.constant dense<0.000000e+00> : vector<16x32xf32>
    %4 = tpu.matmul %3, %1, %cst {dimension_numbers = #tpu.dot_dimension_numbers<[1], [1], [0], [0], [0, 0, 1, 0], [], []>} : vector<16x32xbf16>, vector<32x32xbf16>, vector<16x32xf32> -> vector<16x32xf32>
    %5 = vector.broadcast %2 : vector<1x32xf32> to vector<16x32xf32>
    %6 = arith.addf %4, %5 : vector<16x32xf32>
    %7 = vector.shape_cast %6 : vector<16x32xf32> to vector<2x8x32xf32>
    %8 = arith.truncf %7 : vector<2x8x32xf32> to vector<2x8x32xbf16>
    %cst_6 = arith.constant dense<0.000000e+00> : vector<2x8x8xf32>
    %9 = tpu.matmul %8, %0, %cst_6 {dimension_numbers = #tpu.dot_dimension_numbers<[2], [2], [1], [1], [0, 0, 0, 1, 1, 1], [0], [0]>} : vector<2x8x32xbf16>, vector<2x8x32xbf16>, vector<2x8x8xf32> -> vector<2x8x8xf32>
    %cst_7 = arith.constant dense<0xFF800000> : vector<2x8xf32>
    %10 = vector.multi_reduction <maximumf>, %9, %cst_7 [2] : vector<2x8x8xf32> to vector<2x8xf32>
    %11 = vector.shape_cast %10 : vector<2x8xf32> to vector<2x8x1xf32>
    %12 = vector.broadcast %11 : vector<2x8x1xf32> to vector<2x8x8xf32>
    %13 = arith.subf %9, %12 : vector<2x8x8xf32>
    %14 = math.exp %13 : vector<2x8x8xf32>
    %cst_8 = arith.constant dense<0.000000e+00> : vector<2x8xf32>
    %15 = vector.multi_reduction <add>, %14, %cst_8 [2] : vector<2x8x8xf32> to vector<2x8xf32>
    %16 = vector.shape_cast %15 : vector<2x8xf32> to vector<2x8x1xf32>
    %17 = vector.broadcast %16 : vector<2x8x1xf32> to vector<2x8x8xf32>
    %18 = arith.divf %14, %17 : vector<2x8x8xf32>
    %19 = arith.truncf %18 : vector<2x8x8xf32> to vector<2x8x8xbf16>
    %cst_9 = arith.constant dense<0.000000e+00> : vector<2x8x32xf32>
    %20 = tpu.matmul %19, %0, %cst_9 {dimension_numbers = #tpu.dot_dimension_numbers<[2], [1], [1], [2], [0, 0, 0, 1, 1, 2], [0], [0]>} : vector<2x8x8xbf16>, vector<2x8x32xbf16>, vector<2x8x32xf32> -> vector<2x8x32xf32>
    %c0_10 = arith.constant 0 : index
    %c0_11 = arith.constant 0 : index
    %c0_12 = arith.constant 0 : index
    %21 = vector.load %arg4[%c0_10, %c0_11, %c0_12] : memref<2x8x32xf32, #tpu.memory_space<vmem>>, vector<2x8x32xf32>
    tpu.vector_store %arg4[%c0_10, %c0_11, %c0_12], %20 {strides = array<i32>} : memref<2x8x32xf32, #tpu.memory_space<vmem>>, vector<2x8x32xf32>,
    return
  }
  func.func @transform_0(%arg0: i32) -> (i32, i32, i32) {
    %c0_i32 = arith.constant 0 : i32
    %c0_i32_0 = arith.constant 0 : i32
    %c0_i32_1 = arith.constant 0 : i32
    return %arg0, %c0_i32, %c0_i32_0 : i32, i32, i32
  }
  func.func @transform_1(%arg0: i32) -> (i32, i32) {
    %c0_i32 = arith.constant 0 : i32
    %c0_i32_0 = arith.constant 0 : i32
    %c0_i32_1 = arith.constant 0 : i32
    return %c0_i32, %c0_i32_0 : i32, i32
  }
  func.func @transform_2(%arg0: i32) -> (i32, i32) {
    %c0_i32 = arith.constant 0 : i32
    %c0_i32_0 = arith.constant 0 : i32
    %c0_i32_1 = arith.constant 0 : i32
    return %c0_i32, %c0_i32_0 : i32, i32
  }
  func.func @transform_3(%arg0: i32) -> (i32, i32, i32) {
    %c0_i32 = arith.constant 0 : i32
    %c0_i32_0 = arith.constant 0 : i32
    %c0_i32_1 = arith.constant 0 : i32
    return %arg0, %c0_i32, %c0_i32_0 : i32, i32, i32
  }
}

</mosaic_0001>

<bundles_post_ra>
// kernel: tpu_custom_call.1
= control target key start
LH: loop header
LB: loop body
LE: loop exit
PB: predicated region body
PF: predicated region fallthrough
CT: control target
= control target key end

     0   :  { %8 = vsyncpa [#allocation3], 0  ;;  %s636_s0 = inlined_call_operand.hbm [shape: bf16[2,8,32], index: 0, kind: input, shape index: {}]   ;;  %s637_s1 = inlined_call_operand.hbm [shape: bf16[32,32], index: 1, kind: input, shape index: {}]   ;;  %s638_s2 = inlined_call_operand.hbm [shape: f32[1,32], index: 2, kind: input, shape index: {}]   ;;  %s639_s3 = inlined_call_operand.hbm [shape: f32[2,8,32], index: 3, kind: output, shape index: {}]  }
   0x1   :  { %9 = vsyncpa [#allocation6], 0 }
   0x2   :  { %10 = vsyncpa [#allocation4], 0  ;;  %s531_s12 = smov [#allocation5]   ;;  %s532_s14 = smov [#allocation2]  }
   0x3   :  { %s28_s13 = sshll.u32 %s531_s12, 4  ;;  %s16_s15 = sshll.u32 %s532_s14, 4  ;;  %s29_s13 = int_to_ptr.vmem [resolvable:$true] %s28_s13  ;;  %s561_s15 = int_to_ptr.vmem [resolvable:$true] %s16_s15 }
   0x4   :  { %s437_s18 = scalar_lea.hbm %s637_s1, 256 }
   0x5   :  { %p438_p0 = scmp.ne.s32.totalorder %s637_s1, %s437_s18  ;;  %p441_p1 = scmp.lt.u32.totalorder %s437_s18, %s637_s1 }
   0x7   :  { %p443_p2 = pnand %p441_p1, %p438_p0 }
   0x9   :  { %446 = shalt.err (!%p443_p2)
}
   0xa   :  { %s447_s23 = scalar_lea.vmem %s29_s13, 256  ;;  %p452_p4 = scmp.lt.s32.totalorder %s29_s13, %s29_s13 }
   0xb   :  { %p448_p3 = scmp.ne.s32.totalorder %s29_s13, %s447_s23  ;;  %p453_p5 = scmp.lt.s32.totalorder %s447_s23, %s447_s23 }
   0xd   :  { %p454_p6 = por %p453_p5, %p452_p4 }
   0xf   :  { %p455_p7 = pnand %p454_p6, %p448_p3 }
  0x11   :  { %458 = shalt.err (!%p455_p7)
}
  0x12   :  { %s533_s24 = smov 64   ;;  %s534_s25 = smov 4  }
  0x13   :  { %34 = dma.hbm_to_vmem [thread:$0]  %s637_s1, 256, %s29_s13, [#allocation6], %s533_s24, %s533_s24, %s534_s25  }
  0x14   :  { %s459_s30 = scalar_lea.hbm %s636_s0, 128 }
  0x15   :  { %p460_p8 = scmp.ne.s32.totalorder %s636_s0, %s459_s30  ;;  %p463_p9 = scmp.lt.u32.totalorder %s459_s30, %s636_s0 }
  0x17   :  { %p465_p10 = pnand %p463_p9, %p460_p8 }
  0x19   :  { %468 = shalt.err (!%p465_p10)
}
  0x1a   :  { %s469_s8 = scalar_lea.vmem %s561_s15, 128  ;;  %p474_p12 = scmp.lt.s32.totalorder %s561_s15, %s561_s15 }
  0x1b   :  { %p470_p11 = scmp.ne.s32.totalorder %s561_s15, %s469_s8  ;;  %p475_p13 = scmp.lt.s32.totalorder %s469_s8, %s469_s8 }
  0x1d   :  { %p476_p0 = por %p475_p13, %p474_p12 }
  0x1f   :  { %p477_p1 = pnand %p476_p0, %p470_p11 }
  0x21   :  { %480 = shalt.err (!%p477_p1)
}
  0x22   :  { %22 = dma.hbm_to_vmem [thread:$0]  %s636_s0, 128, %s561_s15, [#allocation3], %s533_s24, %s533_s24, %s534_s25  }
  0x23   :  { %s535_s10 = smov [#allocation7]   ;;  %s481_s14 = scalar_lea.hbm %s638_s2, 16 }
  0x24   :  { %s41_s11 = sshll.u32 %s535_s10, 4  ;;  %p482_p2 = scmp.ne.s32.totalorder %s638_s2, %s481_s14  ;;  %s42_s11 = int_to_ptr.vmem [resolvable:$true] %s41_s11 }
  0x25   :  { %p485_p3 = scmp.lt.u32.totalorder %s481_s14, %s638_s2 }
  0x27   :  { %p487_p4 = pnand %p485_p3, %p482_p2 }
  0x29   :  { %490 = shalt.err (!%p487_p4)
}
  0x2a   :  { %s491_s20 = scalar_lea.vmem %s42_s11, 16  ;;  %s495_s0 = scalar_lea.vmem %s42_s11, 32 }
  0x2b   :  { %p492_p5 = scmp.ne.s32.totalorder %s42_s11, %s491_s20  ;;  %p496_p6 = scmp.lt.s32.totalorder %s42_s11, %s42_s11 }
  0x2c   :  { %p497_p7 = scmp.lt.s32.totalorder %s495_s0, %s491_s20 }
  0x2e   :  { %p498_p8 = por %p497_p7, %p496_p6 }
  0x30   :  { %p499_p9 = pnand %p498_p8, %p492_p5 }
  0x32   :  { %502 = shalt.err (!%p499_p9)
}
  0x33   :  { %44 = dma.hbm_to_vmem [thread:$0]  %s638_s2, 16, %s42_s11, [#allocation6]  }
  0x34   :  { %525 = dma.done.wait [#allocation3], 128  }
  0x35   :  { %526 = vsyncadd [#allocation3], 4294967168 }
  0x36   :  { %527 = dma.done.wait [#allocation6], 272  }
  0x37   :  { %528 = vsyncadd [#allocation6], 4294967024  ;;  %v536_v0 = vmov 0.0   ;;  %vm537_vm0 = vmmov 0   ;;  %vm83_vm1 = vcmask 261120   ;;  %v426_v1 = vld [vmem:[#allocation5] sm:$0xff]  }
  0x38   :  { %384 = vmatprep.subr.bf16.mxu0 %v536_v0  ;;  %388 = vmatprep.mubr.msk.bf16.mxu0 %vm537_vm0, %v536_v0  ;;  %v88_v2 = vsel %vm83_vm1, %v426_v1, 0  ;;  %v55_v3 = vld [vmem:[#allocation2] sm:$0xf]  ;;  %v427_v5 = vld [vmem:[#allocation5 + $0x8] sm:$0xff]   ;;  %v56_v7 = vld [vmem:[#allocation2 + $0x4] sm:$0xf] }
  0x39   :  { %392 = vmatprep.subr.bf16.mxu1 %v536_v0  ;;  %394 = vmatprep.mubr.msk.bf16.mxu1 %vm537_vm0, %v536_v0  ;;  %v140_v4 = vsel %vm83_vm1, %v55_v3, 0  ;;  %v91_v6 = vsel %vm83_vm1, %v427_v5, 0  ;;  %v365_v8 = vcombine.low %v55_v3, %v56_v7  ;;  %v364_v9 = vld [vmem:[#allocation7] ss:$0 sm:$0xff]  ;;  %v186_v16 = vsel %vm83_vm1, %v56_v7, 0  ;;  %s538_s2 = smov [#allocation8]  }
  0x3a   :  { %385 = vmatpush3.bf16.xpose.msra.mxu0 %v88_v2  ;;  %393 = vmatpush3.bf16.xpose.msra.mxu1 %v140_v4  ;;  %vm228_vm2 = vcmask 64512   ;;  %vm256_vm3 = vcmask 1043456   ;;  %s351_s22 = sshll.u32 %s538_s2, 4  ;;  %s352_s22 = int_to_ptr.vmem [resolvable:$true] %s351_s22 }
  0x3b   :  { %386 = vmatprep.subr.bf16.mxu0 %v536_v0  ;;  %398 = vmatprep.subr.bf16.mxu1 %v536_v0  ;;  %v257_v39 = vsel %vm256_vm3, %v55_v3, 0  ;;  %v302_v40 = vsel %vm256_vm3, %v56_v7, 0  ;;  %s503_s23 = scalar_lea.vmem %s352_s22, 256  ;;  %p508_p11 = scmp.lt.s32.totalorder %s352_s22, %s352_s22 }
  0x3c   :  { %p504_p10 = scmp.ne.s32.totalorder %s352_s22, %s503_s23  ;;  %p509_p12 = scmp.lt.s32.totalorder %s503_s23, %s503_s23 }
  0x3e   :  { %p510_p13 = por %p509_p12, %p508_p11 }
  0x40   :  { %p511_p0 = pnand %p510_p13, %p504_p10 }
  0x42   :  { %387 = vmatpush3.bf16.xpose.msra.mxu0 %v91_v6 }
  0x43   :  { %404 = vmatprep.subr.bf16.mxu0 %v536_v0 }
  0x49   :  { %389 = vmatmul.mubr.msk.bf16.vlgmr.msra.gmra.mrb[0].mxu0 %vm83_vm1, %v365_v8 }
  0x4a   :  { %406 = vmatprep.mubr.msk.bf16.mxu0 %vm537_vm0, %v536_v0  ;;  %405 = vmatpush3.bf16.msra.mxu0 %v257_v39 }
 0x11c   :  { %v127_v10 = vpop.f32.mrb[0].mxu0 }
 0x11d   :  { %v128_v11 = vadd.f32 %v364_v9, %v127_v10  ;;  %v390_v12 = vpop.f32.mrb[1].mxu0 }
 0x11e   :  { %v130_v13 = vpop.f32.mrb[2].mxu0 }
 0x11f   :  { %v134_v14 = vpack.c.bf16 %v128_v11, %v128_v11  ;;  %v391_v15 = vpop.f32.mrb[3].mxu0  ;;  %v131_v17 = vadd.f32 %v364_v9, %v130_v13 }
 0x121   :  { %395 = vmatmul.mubr.msk.bf16.vlgmr.msra.gmra.mrb[0].mxu1 %vm83_vm1, %v134_v14  ;;  %v135_v18 = vpack.c.bf16 %v131_v17, %v131_v17 }
 0x122   :  { %399 = vmatpush3.bf16.xpose.msra.mxu1 %v186_v16  ;;  %400 = vmatprep.mubr.msk.bf16.mxu1 %vm537_vm0, %v536_v0 }
 0x123   :  { %410 = vmatprep.subr.bf16.mxu1 %v536_v0 }
 0x129   :  { %401 = vmatmul.mubr.msk.bf16.vlgmr.msra.gmra.mrb[4].mxu1 %vm83_vm1, %v135_v18 }
 0x12a   :  { %412 = vmatprep.mubr.msk.bf16.mxu1 %vm537_vm0, %v536_v0  ;;  %411 = vmatpush3.bf16.msra.mxu1 %v302_v40 }
 0x1f4   :  { %v176_v19 = vpop.f32.mrb[0].mxu1 }
 0x1f5   :  { %v396_v20 = vpop.f32.mrb[1].mxu1  ;;  %v229_v21 = vsel %vm228_vm2, %v176_v19, -inf }
 0x1f6   :  { %230 = vmax.xlane.f32.xlu0 %v229_v21  ;;  %v179_v22 = vpop.f32.mrb[2].mxu1 }
 0x1f7   :  { %v397_v23 = vpop.f32.mrb[3].mxu1 }
 0x1fc   :  { %v222_v24 = vpop.f32.mrb[4].mxu1 }
 0x1fd   :  { %v402_v25 = vpop.f32.mrb[5].mxu1  ;;  %v232_v26 = vsel %vm228_vm2, %v222_v24, -inf }
 0x1fe   :  { %233 = vmax.xlane.f32.xlu0 %v232_v26  ;;  %v225_v27 = vpop.f32.mrb[6].mxu1 }
 0x1ff   :  { %v403_v28 = vpop.f32.mrb[7].mxu1 }
 0x283   :  { %v231_v29 = vpop.xlane.xlu0 %230 }
 0x284   :  { %v235_v30 = vsub.f32 %v176_v19, %v231_v29 }
 0x286   :  { %v237_v31 = vmul.f32 1.442695, %v235_v30 }
 0x288   :  { %429 = vpow2.f32 %v237_v31 }
 0x28b   :  { %v234_v32 = vpop.xlane.xlu0 %233 }
 0x28c   :  { %v236_v33 = vsub.f32 %v222_v24, %v234_v32 }
 0x28e   :  { %v239_v34 = vmul.f32 1.442695, %v236_v33 }
 0x290   :  { %431 = vpow2.f32 %v239_v34 }
 0x292   :  { %v430_v35 = vpop.eup %429 }
 0x293   :  { %v241_v36 = vsel %vm228_vm2, %v430_v35, 0.0 }
 0x294   :  { %242 = vadd.xlane.f32.xlu1 %v241_v36 }
 0x29a   :  { %v432_v37 = vpop.eup %431 }
 0x29b   :  { %v244_v38 = vsel %vm228_vm2, %v432_v37, 0.0 }
 0x29c   :  { %245 = vadd.xlane.f32.xlu1 %v244_v38 }
 0x321   :  { %v243_v41 = vpop.xlane.xlu1 %242 }
 0x322   :  { %433 = vrcp.f32 %v243_v41 }
 0x329   :  { %v246_v42 = vpop.xlane.xlu1 %245 }
 0x32a   :  { %435 = vrcp.f32 %v246_v42 }
 0x32c   :  { %v434_v43 = vpop.eup %433 }
 0x32d   :  { %v248_v44 = vmul.f32 %v434_v43, %v430_v35 }
 0x32f   :  { %v251_v45 = vpack.c.bf16 %v248_v44, %v248_v44 }
 0x331   :  { %407 = vmatmul.mubr.msk.bf16.vlgmr.msra.gmra.mrb[4].mxu0 %vm228_vm2, %v251_v45 }
 0x334   :  { %v436_v46 = vpop.eup %435 }
 0x335   :  { %v250_v47 = vmul.f32 %v436_v46, %v432_v37 }
 0x337   :  { %v252_v48 = vpack.c.bf16 %v250_v47, %v250_v47 }
 0x339   :  { %413 = vmatmul.mubr.msk.bf16.vlgmr.msra.gmra.mrb[8].mxu1 %vm228_vm2, %v252_v48 }
 0x404   :  { %v293_v49 = vpop.f32.mrb[4].mxu0 }
 0x405   :  { %344 = vst.msk [vmem:[#allocation8] sm:$0xff] %vm83_vm1, %v293_v49  ;;  %v408_v50 = vpop.f32.mrb[5].mxu0 }
 0x406   :  { %v296_v51 = vpop.f32.mrb[6].mxu0 }
 0x407   :  { %v409_v52 = vpop.f32.mrb[7].mxu0 }
 0x40c   :  { %v338_v53 = vpop.f32.mrb[8].mxu1 }
 0x40d   :  { %345 = vst.msk [vmem:[#allocation8 + $0x8] sm:$0xff] %vm83_vm1, %v338_v53  ;;  %v414_v54 = vpop.f32.mrb[9].mxu1 }
 0x40e   :  { %v341_v55 = vpop.f32.mrb[10].mxu1 }
 0x40f   :  { %514 = shalt.err (!%p511_p0)
}
 0x410   :  { %s515_s26 = scalar_lea.hbm %s639_s3, 256 }
 0x411   :  { %p516_p1 = scmp.ne.s32.totalorder %s639_s3, %s515_s26  ;;  %p519_p2 = scmp.lt.u32.totalorder %s515_s26, %s639_s3 }
 0x413   :  { %p521_p3 = pnand %p519_p2, %p516_p1 }
 0x415   :  { %524 = shalt.err (!%p521_p3)
}
 0x416   :  { %s539_s4 = smov 128   ;;  %s540_s5 = smov 8   ;;  %v415_v56 = vpop.f32.mrb[11].mxu1 }
 0x417   :  { %357 = dma.vmem_to_hbm [thread:$0]  %s352_s22, 256, %s639_s3, [#allocation4], %s539_s4, %s539_s4, %s540_s5  }
 0x418   :  { %529 = dma.done.wait [#allocation4], 256  }
 0x419   :  { %530 = vsyncadd [#allocation4], 4294967040 }
 0x41a   :  { %361 = vsyncpa [#allocation3], 1 }
 0x41b   :  { %362 = vsyncpa [#allocation6], 1 }
 0x41c   :  { %363 = vsyncpa [#allocation4], 1 }

// kernel: tpu_custom_call.1
= control target key start
LH: loop header
LB: loop body
LE: loop exit
PB: predicated region body
PF: predicated region fallthrough
CT: control target
= control target key end

     0   :  { %8 = vsyncpa [#allocation3], 0  ;;  %s636_s0 = inlined_call_operand.hbm [shape: bf16[2,8,32], index: 0, kind: input, shape index: {}]   ;;  %s637_s1 = inlined_call_operand.hbm [shape: bf16[32,32], index: 1, kind: input, shape index: {}]   ;;  %s638_s2 = inlined_call_operand.hbm [shape: f32[1,32], index: 2, kind: input, shape index: {}]   ;;  %s639_s3 = inlined_call_operand.hbm [shape: f32[2,8,32], index: 3, kind: output, shape index: {}]  }
   0x1   :  { %9 = vsyncpa [#allocation6], 0 }
   0x2   :  { %10 = vsyncpa [#allocation4], 0  ;;  %s531_s12 = smov [#allocation5]   ;;  %s532_s14 = smov [#allocation2]  }
   0x3   :  { %s28_s13 = sshll.u32 %s531_s12, 4  ;;  %s16_s15 = sshll.u32 %s532_s14, 4  ;;  %s29_s13 = int_to_ptr.vmem [resolvable:$true] %s28_s13  ;;  %s561_s15 = int_to_ptr.vmem [resolvable:$true] %s16_s15 }
   0x4   :  { %s437_s18 = scalar_lea.hbm %s637_s1, 256 }
   0x5   :  { %p438_p0 = scmp.ne.s32.totalorder %s637_s1, %s437_s18  ;;  %p441_p1 = scmp.lt.u32.totalorder %s437_s18, %s637_s1 }
   0x7   :  { %p443_p2 = pnand %p441_p1, %p438_p0 }
   0x9   :  { %446 = shalt.err (!%p443_p2)
}
   0xa   :  { %s447_s23 = scalar_lea.vmem %s29_s13, 256  ;;  %p452_p4 = scmp.lt.s32.totalorder %s29_s13, %s29_s13 }
   0xb   :  { %p448_p3 = scmp.ne.s32.totalorder %s29_s13, %s447_s23  ;;  %p453_p5 = scmp.lt.s32.totalorder %s447_s23, %s447_s23 }
   0xd   :  { %p454_p6 = por %p453_p5, %p452_p4 }
   0xf   :  { %p455_p7 = pnand %p454_p6, %p448_p3 }
  0x11   :  { %458 = shalt.err (!%p455_p7)
}
  0x12   :  { %s533_s24 = smov 64   ;;  %s534_s25 = smov 4  }
  0x13   :  { %34 = dma.hbm_to_vmem [thread:$0]  %s637_s1, 256, %s29_s13, [#allocation6], %s533_s24, %s533_s24, %s534_s25  }
  0x14   :  { %s459_s30 = scalar_lea.hbm %s636_s0, 128 }
  0x15   :  { %p460_p8 = scmp.ne.s32.totalorder %s636_s0, %s459_s30  ;;  %p463_p9 = scmp.lt.u32.totalorder %s459_s30, %s636_s0 }
  0x17   :  { %p465_p10 = pnand %p463_p9, %p460_p8 }
  0x19   :  { %468 = shalt.err (!%p465_p10)
}
  0x1a   :  { %s469_s8 = scalar_lea.vmem %s561_s15, 128  ;;  %p474_p12 = scmp.lt.s32.totalorder %s561_s15, %s561_s15 }
  0x1b   :  { %p470_p11 = scmp.ne.s32.totalorder %s561_s15, %s469_s8  ;;  %p475_p13 = scmp.lt.s32.totalorder %s469_s8, %s469_s8 }
  0x1d   :  { %p476_p0 = por %p475_p13, %p474_p12 }
  0x1f   :  { %p477_p1 = pnand %p476_p0, %p470_p11 }
  0x21   :  { %480 = shalt.err (!%p477_p1)
}
  0x22   :  { %22 = dma.hbm_to_vmem [thread:$0]  %s636_s0, 128, %s561_s15, [#allocation3], %s533_s24, %s533_s24, %s534_s25  }
  0x23   :  { %s535_s10 = smov [#allocation7]   ;;  %s481_s14 = scalar_lea.hbm %s638_s2, 16 }
  0x24   :  { %s41_s11 = sshll.u32 %s535_s10, 4  ;;  %p482_p2 = scmp.ne.s32.totalorder %s638_s2, %s481_s14  ;;  %s42_s11 = int_to_ptr.vmem [resolvable:$true] %s41_s11 }
  0x25   :  { %p485_p3 = scmp.lt.u32.totalorder %s481_s14, %s638_s2 }
  0x27   :  { %p487_p4 = pnand %p485_p3, %p482_p2 }
  0x29   :  { %490 = shalt.err (!%p487_p4)
}
  0x2a   :  { %s491_s20 = scalar_lea.vmem %s42_s11, 16  ;;  %s495_s0 = scalar_lea.vmem %s42_s11, 32 }
  0x2b   :  { %p492_p5 = scmp.ne.s32.totalorder %s42_s11, %s491_s20  ;;  %p496_p6 = scmp.lt.s32.totalorder %s42_s11, %s42_s11 }
  0x2c   :  { %p497_p7 = scmp.lt.s32.totalorder %s495_s0, %s491_s20 }
  0x2e   :  { %p498_p8 = por %p497_p7, %p496_p6 }
  0x30   :  { %p499_p9 = pnand %p498_p8, %p492_p5 }
  0x32   :  { %502 = shalt.err (!%p499_p9)
}
  0x33   :  { %44 = dma.hbm_to_vmem [thread:$0]  %s638_s2, 16, %s42_s11, [#allocation6]  }
  0x34   :  { %525 = dma.done.wait [#allocation3], 128  }
  0x35   :  { %526 = vsyncadd [#allocation3], 4294967168 }
  0x36   :  { %527 = dma.done.wait [#allocation6], 272  }
  0x37   :  { %528 = vsyncadd [#allocation6], 4294967024  ;;  %v536_v0 = vmov 0.0   ;;  %vm537_vm0 = vmmov 0   ;;  %vm83_vm1 = vcmask 261120   ;;  %v426_v1 = vld [vmem:[#allocation5] sm:$0xff]  }
  0x38   :  { %384 = vmatprep.subr.bf16.mxu0 %v536_v0  ;;  %388 = vmatprep.mubr.msk.bf16.mxu0 %vm537_vm0, %v536_v0  ;;  %v88_v2 = vsel %vm83_vm1, %v426_v1, 0  ;;  %v55_v3 = vld [vmem:[#allocation2] sm:$0xf]  ;;  %v427_v5 = vld [vmem:[#allocation5 + $0x8] sm:$0xff]   ;;  %v56_v7 = vld [vmem:[#allocation2 + $0x4] sm:$0xf] }
  0x39   :  { %392 = vmatprep.subr.bf16.mxu1 %v536_v0  ;;  %394 = vmatprep.mubr.msk.bf16.mxu1 %vm537_vm0, %v536_v0  ;;  %v140_v4 = vsel %vm83_vm1, %v55_v3, 0  ;;  %v91_v6 = vsel %vm83_vm1, %v427_v5, 0  ;;  %v365_v8 = vcombine.low %v55_v3, %v56_v7  ;;  %v364_v9 = vld [vmem:[#allocation7] ss:$0 sm:$0xff]  ;;  %v186_v16 = vsel %vm83_vm1, %v56_v7, 0  ;;  %s538_s2 = smov [#allocation8]  }
  0x3a   :  { %385 = vmatpush3.bf16.xpose.msra.mxu0 %v88_v2  ;;  %393 = vmatpush3.bf16.xpose.msra.mxu1 %v140_v4  ;;  %vm228_vm2 = vcmask 64512   ;;  %vm256_vm3 = vcmask 1043456   ;;  %s351_s22 = sshll.u32 %s538_s2, 4  ;;  %s352_s22 = int_to_ptr.vmem [resolvable:$true] %s351_s22 }
  0x3b   :  { %386 = vmatprep.subr.bf16.mxu0 %v536_v0  ;;  %398 = vmatprep.subr.bf16.mxu1 %v536_v0  ;;  %v257_v39 = vsel %vm256_vm3, %v55_v3, 0  ;;  %v302_v40 = vsel %vm256_vm3, %v56_v7, 0  ;;  %s503_s23 = scalar_lea.vmem %s352_s22, 256  ;;  %p508_p11 = scmp.lt.s32.totalorder %s352_s22, %s352_s22 }
  0x3c   :  { %p504_p10 = scmp.ne.s32.totalorder %s352_s22, %s503_s23  ;;  %p509_p12 = scmp.lt.s32.totalorder %s503_s23, %s503_s23 }
  0x3e   :  { %p510_p13 = por %p509_p12, %p508_p11 }
  0x40   :  { %p511_p0 = pnand %p510_p13, %p504_p10 }
  0x42   :  { %387 = vmatpush3.bf16.xpose.msra.mxu0 %v91_v6 }
  0x43   :  { %404 = vmatprep.subr.bf16.mxu0 %v536_v0 }
  0x49   :  { %389 = vmatmul.mubr.msk.bf16.vlgmr.msra.gmra.mrb[0].mxu0 %vm83_vm1, %v365_v8 }
  0x4a   :  { %406 = vmatprep.mubr.msk.bf16.mxu0 %vm537_vm0, %v536_v0  ;;  %405 = vmatpush3.bf16.msra.mxu0 %v257_v39 }
 0x11c   :  { %v127_v10 = vpop.f32.mrb[0].mxu0 }
 0x11d   :  { %v128_v11 = vadd.f32 %v364_v9, %v127_v10  ;;  %v390_v12 = vpop.f32.mrb[1].mxu0 }
 0x11e   :  { %v130_v13 = vpop.f32.mrb[2].mxu0 }
 0x11f   :  { %v134_v14 = vpack.c.bf16 %v128_v11, %v128_v11  ;;  %v391_v15 = vpop.f32.mrb[3].mxu0  ;;  %v131_v17 = vadd.f32 %v364_v9, %v130_v13 }
 0x121   :  { %395 = vmatmul.mubr.msk.bf16.vlgmr.msra.gmra.mrb[0].mxu1 %vm83_vm1, %v134_v14  ;;  %v135_v18 = vpack.c.bf16 %v131_v17, %v131_v17 }
 0x122   :  { %399 = vmatpush3.bf16.xpose.msra.mxu1 %v186_v16  ;;  %400 = vmatprep.mubr.msk.bf16.mxu1 %vm537_vm0, %v536_v0 }
 0x123   :  { %410 = vmatprep.subr.bf16.mxu1 %v536_v0 }
 0x129   :  { %401 = vmatmul.mubr.msk.bf16.vlgmr.msra.gmra.mrb[4].mxu1 %vm83_vm1, %v135_v18 }
 0x12a   :  { %412 = vmatprep.mubr.msk.bf16.mxu1 %vm537_vm0, %v536_v0  ;;  %411 = vmatpush3.bf16.msra.mxu1 %v302_v40 }
 0x1f4   :  { %v176_v19 = vpop.f32.mrb[0].mxu1 }
 0x1f5   :  { %v396_v20 = vpop.f32.mrb[1].mxu1  ;;  %v229_v21 = vsel %vm228_vm2, %v176_v19, -inf }
 0x1f6   :  { %230 = vmax.xlane.f32.xlu0 %v229_v21  ;;  %v179_v22 = vpop.f32.mrb[2].mxu1 }
 0x1f7   :  { %v397_v23 = vpop.f32.mrb[3].mxu1 }
 0x1fc   :  { %v222_v24 = vpop.f32.mrb[4].mxu1 }
 0x1fd   :  { %v402_v25 = vpop.f32.mrb[5].mxu1  ;;  %v232_v26 = vsel %vm228_vm2, %v222_v24, -inf }
 0x1fe   :  { %233 = vmax.xlane.f32.xlu0 %v232_v26  ;;  %v225_v27 = vpop.f32.mrb[6].mxu1 }
 0x1ff   :  { %v403_v28 = vpop.f32.mrb[7].mxu1 }
 0x283   :  { %v231_v29 = vpop.xlane.xlu0 %230 }
 0x284   :  { %v235_v30 = vsub.f32 %v176_v19, %v231_v29 }
 0x286   :  { %v237_v31 = vmul.f32 1.442695, %v235_v30 }
 0x288   :  { %429 = vpow2.f32 %v237_v31 }
 0x28b   :  { %v234_v32 = vpop.xlane.xlu0 %233 }
 0x28c   :  { %v236_v33 = vsub.f32 %v222_v24, %v234_v32 }
 0x28e   :  { %v239_v34 = vmul.f32 1.442695, %v236_v33 }
 0x290   :  { %431 = vpow2.f32 %v239_v34 }
 0x292   :  { %v430_v35 = vpop.eup %429 }
 0x293   :  { %v241_v36 = vsel %vm228_vm2, %v430_v35, 0.0 }
 0x294   :  { %242 = vadd.xlane.f32.xlu1 %v241_v36 }
 0x29a   :  { %v432_v37 = vpop.eup %431 }
 0x29b   :  { %v244_v38 = vsel %vm228_vm2, %v432_v37, 0.0 }
 0x29c   :  { %245 = vadd.xlane.f32.xlu1 %v244_v38 }
 0x321   :  { %v243_v41 = vpop.xlane.xlu1 %242 }
 0x322   :  { %433 = vrcp.f32 %v243_v41 }
 0x329   :  { %v246_v42 = vpop.xlane.xlu1 %245 }
 0x32a   :  { %435 = vrcp.f32 %v246_v42 }
 0x32c   :  { %v434_v43 = vpop.eup %433 }
 0x32d   :  { %v248_v44 = vmul.f32 %v434_v43, %v430_v35 }
 0x32f   :  { %v251_v45 = vpack.c.bf16 %v248_v44, %v248_v44 }
 0x331   :  { %407 = vmatmul.mubr.msk.bf16.vlgmr.msra.gmra.mrb[4].mxu0 %vm228_vm2, %v251_v45 }
 0x334   :  { %v436_v46 = vpop.eup %435 }
 0x335   :  { %v250_v47 = vmul.f32 %v436_v46, %v432_v37 }
 0x337   :  { %v252_v48 = vpack.c.bf16 %v250_v47, %v250_v47 }
 0x339   :  { %413 = vmatmul.mubr.msk.bf16.vlgmr.msra.gmra.mrb[8].mxu1 %vm228_vm2, %v252_v48 }
 0x404   :  { %v293_v49 = vpop.f32.mrb[4].mxu0 }
 0x405   :  { %344 = vst.msk [vmem:[#allocation8] sm:$0xff] %vm83_vm1, %v293_v49  ;;  %v408_v50 = vpop.f32.mrb[5].mxu0 }
 0x406   :  { %v296_v51 = vpop.f32.mrb[6].mxu0 }
 0x407   :  { %v409_v52 = vpop.f32.mrb[7].mxu0 }
 0x40c   :  { %v338_v53 = vpop.f32.mrb[8].mxu1 }
 0x40d   :  { %345 = vst.msk [vmem:[#allocation8 + $0x8] sm:$0xff] %vm83_vm1, %v338_v53  ;;  %v414_v54 = vpop.f32.mrb[9].mxu1 }
 0x40e   :  { %v341_v55 = vpop.f32.mrb[10].mxu1 }
 0x40f   :  { %514 = shalt.err (!%p511_p0)
}
 0x410   :  { %s515_s26 = scalar_lea.hbm %s639_s3, 256 }
 0x411   :  { %p516_p1 = scmp.ne.s32.totalorder %s639_s3, %s515_s26  ;;  %p519_p2 = scmp.lt.u32.totalorder %s515_s26, %s639_s3 }
 0x413   :  { %p521_p3 = pnand %p519_p2, %p516_p1 }
 0x415   :  { %524 = shalt.err (!%p521_p3)
}
 0x416   :  { %s539_s4 = smov 128   ;;  %s540_s5 = smov 8   ;;  %v415_v56 = vpop.f32.mrb[11].mxu1 }
 0x417   :  { %357 = dma.vmem_to_hbm [thread:$0]  %s352_s22, 256, %s639_s3, [#allocation4], %s539_s4, %s539_s4, %s540_s5  }
 0x418   :  { %529 = dma.done.wait [#allocation4], 256  }
 0x419   :  { %530 = vsyncadd [#allocation4], 4294967040 }
 0x41a   :  { %361 = vsyncpa [#allocation3], 1 }
 0x41b   :  { %362 = vsyncpa [#allocation6], 1 }
 0x41c   :  { %363 = vsyncpa [#allocation4], 1 }

</bundles_post_ra>
